<compile_context>
chip_gen: v6e
topology: v6e:2x2x1
jax: 0.10.0
libtpu: 0.0.40
codegen_flags: <defaults>
</compile_context>

<pallas_src>
import functools

import jax
import jax.numpy as jnp
from jax.experimental import pallas as pl
from jax.experimental.pallas import tpu as pltpu


def _swish_kernel(x_ref, o_ref):
    # f32 intermediates for every float dtype: EUP exp + VPU mul are fully
    # hidden under the HBM DMA, and f32 opmath matches PyTorch for bf16/f16.
    xf = x_ref[...].astype(jnp.float32)
    o_ref[...] = (xf * jax.nn.sigmoid(xf)).astype(o_ref.dtype)


def _sublane_pack(dtype) -> int:
    # Native sublane-packing multiple: 8 rows for 4-byte, 16 for 2-byte,
    # 32 for 1-byte dtypes (keeps loads/stores unmasked).
    return max(8, 32 // max(1, jnp.dtype(dtype).itemsize))


def _num_tensorcores() -> int:
    """Best-effort TensorCores-per-chip (2 on v7x, 1 on v5e/v6e)."""
    try:
        info = pltpu.get_tpu_info()
    except Exception:
        return 1
    for attr in ("num_cores", "core_count", "num_tensorcores",
                 "tensorcores_per_chip", "num_cores_per_chip"):
        v = getattr(info, attr, None)
        if isinstance(v, int) and v > 0:
            return v
    return 1


def _round_up(x: int, m: int) -> int:
    return ((x + m - 1) // m) * m


def _swish_2d(x2d, *, target_block_bytes, vmem_limit_bytes, donate_input):
    rows, lane_width = x2d.shape
    dtype = x2d.dtype
    itemsize = jnp.dtype(dtype).itemsize
    pack = _sublane_pack(dtype)

    # ~4 MiB blocks (mem-bound sweet spot, overhead amortized on v7x), rows a
    # multiple of the dtype's sublane-packing factor.
    tile_rows = max(pack,
                    (target_block_bytes // (lane_width * itemsize)) // pack * pack)

    if rows <= tile_rows:
        if rows > 2 * pack and _num_tensorcores() >= 2:
            # Dual-TC chips (v7x): 2 blocks so dimension_semantics=("parallel",)
            # shards them across both TensorCores.
            tile_rows = _round_up(pl.cdiv(rows, 2), pack)
        else:
            # Single block equal to the whole slab: no (8,128) divisibility
            # requirement, no partial blocks, single DMA in/out.
            tile_rows = rows

    grid_rows = pl.cdiv(rows, tile_rows)

    return pl.pallas_call(
        _swish_kernel,
        out_shape=jax.ShapeDtypeStruct((rows, lane_width), dtype),
        grid_spec=pl.GridSpec(
            grid=(grid_rows,),
            in_specs=[pl.BlockSpec((tile_rows, lane_width), lambda i: (i, 0))],
            out_specs=pl.BlockSpec((tile_rows, lane_width), lambda i: (i, 0)),
        ),
        input_output_aliases={0: 0} if donate_input else {},
        compiler_params=pltpu.CompilerParams(
            dimension_semantics=("parallel",),
            # 2 arrays x 2 buffers x 4 MiB blocks = 16 MiB + f32 temporaries;
            # 48 MiB gives headroom and stays under v7x's 64 MiB physical VMEM.
            vmem_limit_bytes=vmem_limit_bytes,
        ),
    )(x2d)


def swish(
    x: jax.Array,
    *,
    lane_width: int = 512,
    target_block_bytes: int = 4 * 1024 * 1024,
    vmem_limit_bytes: int = 48 * 1024 * 1024,
    min_pallas_bytes: int = 256 * 1024,
    donate_input: bool = False,
) -> jax.Array:
    """Elementwise Swish for any shape; flattens to a lane-dense 2D slab."""
    if not jnp.issubdtype(x.dtype, jnp.floating):
        # Mirrors torch.sigmoid, which rejects integer dtypes.
        raise TypeError(f"swish: floating dtype required, got {x.dtype}")

    orig_shape = x.shape
    n = x.size
    if n == 0:
        return x

    itemsize = jnp.dtype(x.dtype).itemsize

    def _plain(v):
        vf = v.astype(jnp.float32)
        return (vf * jax.nn.sigmoid(vf)).astype(v.dtype)

    # Tiny-input fast path: below ~256 KiB the pallas_call dispatch + reshape
    # overhead dominates and XLA fuses the plain expression anyway.
    if n * itemsize < min_pallas_bytes:
        return _plain(x)

    x_flat = x.reshape(-1)
    n_bulk = (n // lane_width) * lane_width
    if n_bulk == 0:
        return _plain(x)

    run = functools.partial(
        _swish_2d,
        target_block_bytes=target_block_bytes,
        vmem_limit_bytes=vmem_limit_bytes,
        donate_input=donate_input,
    )

    if n_bulk == n:
        out2d = run(x_flat.reshape(n // lane_width, lane_width))
        return out2d.reshape(orig_shape)

    # Ragged tail (< lane_width elements): kernel on the lane-aligned bulk,
    # plain JAX on the tiny tail.  No jnp.pad of the full input and no
    # full-output slice round trip (those cost ~2-3x HBM traffic).
    bulk2d = run(x_flat[:n_bulk].reshape(n_bulk // lane_width, lane_width))
    tail = _plain(x_flat[n_bulk:])
    return jnp.concatenate([bulk2d.reshape(-1), tail]).reshape(orig_shape)


if __name__ == "__main__":
    key = jax.random.PRNGKey(0)

    # NCHW input, small shape: batch=2, channels=4, H=W=16 (2048 elements).
    x = jax.random.normal(key, (2, 4, 16, 16), dtype=jnp.float32)
    ref = x * jax.nn.sigmoid(x)

    # 1) Default path: tiny input -> plain-JAX fast path.
    y = swish(x)
    jax.block_until_ready(y)
    assert y.shape == x.shape and y.dtype == x.dtype
    assert jnp.allclose(y, ref, atol=1e-6, rtol=1e-6)

    # 2) Force the Pallas kernel at the same shape (lane-aligned: 2048 = 4*512).
    y_pallas = swish(x, min_pallas_bytes=0)
    jax.block_until_ready(y_pallas)
    assert y_pallas.shape == x.shape and y_pallas.dtype == x.dtype
    assert jnp.allclose(y_pallas, ref, atol=1e-6, rtol=1e-6)

    # 3) Ragged (non-lane-aligned) size through the bulk+tail path.
    key2 = jax.random.PRNGKey(0)
    xr = jax.random.normal(key2, (2, 4, 16, 17), dtype=jnp.float32)  # 2176 elems
    yr = swish(xr, min_pallas_bytes=0)
    jax.block_until_ready(yr)
    ref_r = xr * jax.nn.sigmoid(xr)
    assert yr.shape == xr.shape and yr.dtype == xr.dtype
    assert jnp.allclose(yr, ref_r, atol=1e-6, rtol=1e-6)

    # 4) bf16 storage, f32 opmath.
    xb = jax.random.normal(jax.random.PRNGKey(0), (16, 512), dtype=jnp.bfloat16)
    yb = swish(xb, min_pallas_bytes=0)
    jax.block_until_ready(yb)
    xb_f32 = xb.astype(jnp.float32)
    ref_b = (xb_f32 * jax.nn.sigmoid(xb_f32)).astype(jnp.bfloat16)
    assert yb.shape == xb.shape and yb.dtype == xb.dtype
    assert jnp.allclose(yb.astype(jnp.float32), ref_b.astype(jnp.float32),
                        atol=1e-2, rtol=1e-2)

    print("KERNEL_OK")
</pallas_src>

<mosaic_0001>
module attributes {stable_mosaic.version = 11 : i64} {
  func.func @_swish_kernel(%arg0: i32, %arg1: memref<4x512xf32, #tpu.memory_space<vmem>>, %arg2: memref<4x512xf32, #tpu.memory_space<vmem>>) attributes {dimension_semantics = [#tpu.dimension_semantics<parallel>], iteration_bounds = array<i64: 1>, scalar_prefetch = 0 : i64, scratch_operands = 0 : i64, tpu.core_type = #tpu.core_type<tc>, window_params = [{transform_indices = @transform_0, window_bounds = array<i64: 4, 512>}, {transform_indices = @transform_1, window_bounds = array<i64: 4, 512>}]} {
    %c0 = arith.constant 0 : index
    %c0_0 = arith.constant 0 : index
    %0 = vector.load %arg1[%c0, %c0_0] : memref<4x512xf32, #tpu.memory_space<vmem>>, vector<4x512xf32>
    %1 = arith.negf %0 : vector<4x512xf32>
    %2 = math.exp %1 : vector<4x512xf32>
    %cst = arith.constant 1.000000e+00 : f32
    %3 = vector.broadcast %cst : f32 to vector<4x512xf32>
    %4 = arith.addf %3, %2 : vector<4x512xf32>
    %5 = arith.divf %3, %4 : vector<4x512xf32>
    %6 = arith.mulf %0, %5 : vector<4x512xf32>
    %c0_1 = arith.constant 0 : index
    %c0_2 = arith.constant 0 : index
    %7 = vector.load %arg2[%c0_1, %c0_2] : memref<4x512xf32, #tpu.memory_space<vmem>>, vector<4x512xf32>
    tpu.vector_store %arg2[%c0_1, %c0_2], %6 {strides = array<i32>} : memref<4x512xf32, #tpu.memory_space<vmem>>, vector<4x512xf32>,
    return
  }
  func.func @transform_0(%arg0: i32) -> (i32, i32) {
    %c0_i32 = arith.constant 0 : i32
    %c0_i32_0 = arith.constant 0 : i32
    return %arg0, %c0_i32 : i32, i32
  }
  func.func @transform_1(%arg0: i32) -> (i32, i32) {
    %c0_i32 = arith.constant 0 : i32
    %c0_i32_0 = arith.constant 0 : i32
    return %arg0, %c0_i32 : i32, i32
  }
}

</mosaic_0001>

<bundles_post_ra>
// kernel: tpu_custom_call.1
= control target key start
LH: loop header
LB: loop body
LE: loop exit
PB: predicated region body
PF: predicated region fallthrough
CT: control target
= control target key end

     0   :  { %6 = vsyncpa [#allocation3], 0  ;;  %s128_s0 = inlined_call_operand.hbm [shape: f32[4,512], index: 0, kind: input, shape index: {}]   ;;  %s129_s1 = inlined_call_operand.hbm [shape: f32[4,512], index: 1, kind: output, shape index: {}]  }
   0x1   :  { %7 = vsyncpa [#allocation4], 0  ;;  %s110_s6 = smov [#allocation2]  }
   0x2   :  { %s14_s7 = sshll.u32 %s110_s6, 4  ;;  %s15_s7 = int_to_ptr.vmem [resolvable:$true] %s14_s7 }
   0x3   :  { %s74_s8 = scalar_lea.vmem %s15_s7, 256  ;;  %p79_p1 = scmp.lt.s32.totalorder %s15_s7, %s15_s7 }
   0x4   :  { %p75_p0 = scmp.ne.s32.totalorder %s15_s7, %s74_s8  ;;  %p80_p2 = scmp.lt.s32.totalorder %s74_s8, %s74_s8 }
   0x6   :  { %p81_p3 = por %p80_p2, %p79_p1 }
   0x8   :  { %p82_p4 = pnand %p81_p3, %p75_p0 }
   0xa   :  { %85 = shalt.err (!%p82_p4)
}
   0xb   :  { %17 = dma.hbm_to_vmem [thread:$0]  %s128_s0, 256, %s15_s7, [#allocation3]  }
   0xc   :  { %106 = dma.done.wait [#allocation3], 256  }
   0xd   :  { %107 = vsyncadd [#allocation3], 4294967040  ;;  %v21_v0 = vld [vmem:[#allocation2] sm:$0xff]  ;;  %v22_v1 = vld [vmem:[#allocation2 + $0x8] sm:$0xff]  ;;  %s111_s11 = smov [#allocation5]  }
   0xe   :  { %v54_v2 = vmul.f32 -1.442695, %v21_v0  ;;  %v55_v3 = vmul.f32 -1.442695, %v22_v1  ;;  %s45_s12 = sshll.u32 %s111_s11, 4  ;;  %s46_s12 = int_to_ptr.vmem [resolvable:$true] %s45_s12 }
   0xf   :  { %s86_s0 = scalar_lea.vmem %s46_s12, 256  ;;  %p91_p6 = scmp.lt.s32.totalorder %s46_s12, %s46_s12 }
  0x10   :  { %58 = vpow2.f32 %v54_v2  ;;  %p87_p5 = scmp.ne.s32.totalorder %s46_s12, %s86_s0  ;;  %p92_p7 = scmp.lt.s32.totalorder %s86_s0, %s86_s0 }
  0x11   :  { %60 = vpow2.f32 %v55_v3 }
  0x12   :  { %p93_p8 = por %p92_p7, %p91_p6 }
  0x14   :  { %p94_p9 = pnand %p93_p8, %p87_p5 }
  0x1d   :  { %v59_v4 = vpop.eup %58 }
  0x1e   :  { %v61_v5 = vpop.eup %60  ;;  %v29_v6 = vadd.f32 1.0, %v59_v4 }
  0x1f   :  { %v30_v7 = vadd.f32 1.0, %v61_v5 }
  0x20   :  { %62 = vrcp.f32 %v29_v6 }
  0x21   :  { %64 = vrcp.f32 %v30_v7 }
  0x2d   :  { %v63_v8 = vpop.eup %62 }
  0x2e   :  { %v65_v9 = vpop.eup %64  ;;  %v35_v10 = vmul.f32 %v63_v8, %v21_v0 }
  0x2f   :  { %v36_v11 = vmul.f32 %v65_v9, %v22_v1 }
  0x30   :  { %37 = vst [vmem:[#allocation5] sm:$0xff] %v35_v10 }
  0x31   :  { %38 = vst [vmem:[#allocation5 + $0x8] sm:$0xff] %v36_v11 }
  0x32   :  { %97 = shalt.err (!%p94_p9)
}
  0x33   :  { %48 = dma.vmem_to_hbm [thread:$0]  %s46_s12, 256, %s129_s1, [#allocation4]  }
  0x34   :  { %108 = dma.done.wait [#allocation4], 256  }
  0x35   :  { %109 = vsyncadd [#allocation4], 4294967040 }
  0x36   :  { %52 = vsyncpa [#allocation3], 1 }
  0x37   :  { %53 = vsyncpa [#allocation4], 1 }

</bundles_post_ra>
